<compile_context>
chip_gen: v5e
topology: v5e:2x2
jax: 0.10.0
libtpu: 0.0.40
codegen_flags: <defaults>
</compile_context>

<pallas_src>
import jax
import jax.numpy as jnp
import numpy as np
from jax.experimental import pallas as pl
from jax.experimental.pallas import tpu as pltpu

NUM_FEATURE = 4          # len(query_types)
HIDDEN = 10
OUTPUT_DIM = 3           # TODO(synk): predictor_output_dim undefined in source; chosen = 3

# ---- packed parameter slab layout (SLAB_ROWS x 128 lanes, f32, zero-padded) ----
SLAB_LANES = 128
R_W1 = 0                          # rows 0..3     : w1 (4,10)  in lanes 0..9
R_B1 = 4                          # row  4        : b1 (10,)   in lanes 0..9
R_B2 = 5                          # row  5        : b2 (10,)   in lanes 0..9
R_B3 = 6                          # row  6        : b3 (3,)    in lanes 0..2
# row 7: padding (keeps the MXU weight tiles sublane-aligned to 8)
R_W2 = 8                          # rows 8..135   : w2 zero-padded to (128,128)
R_W3 = 136                        # rows 136..263 : w3 zero-padded to (128,128)
SLAB_ROWS = 264                   # multiple of 8


def mlp_kernel(x_ref, p_ref, o_ref):
    x = x_ref[...]                              # (tb, NUM_FEATURE)
    tb = x.shape[0]

    # ---- layer 1 on the VPU: K=4 unrolled broadcast-FMAs at 128-lane width ----
    # Slab padding lanes are zero, so lanes >= HIDDEN of h stay zero.
    h = jnp.broadcast_to(p_ref[R_B1:R_B1 + 1, :], (tb, SLAB_LANES))
    for k in range(NUM_FEATURE):
        h = h + x[:, k:k + 1] * p_ref[R_W1 + k:R_W1 + k + 1, :]
    h = jnp.maximum(h, 0.0)                     # ReLU, (tb, 128)

    # ---- layer 2 on the MXU: (tb,128) @ (128,128), rows >= HIDDEN of w2 are 0 ----
    w2 = p_ref[R_W2:R_W2 + SLAB_LANES, :]
    h = jnp.dot(h, w2, preferred_element_type=jnp.float32,
                precision=jax.lax.Precision.HIGHEST)
    h = jnp.maximum(h + p_ref[R_B2:R_B2 + 1, :], 0.0)   # bias + ReLU

    # ---- layer 3 on the MXU ----
    w3 = p_ref[R_W3:R_W3 + SLAB_LANES, :]
    y = jnp.dot(h, w3, preferred_element_type=jnp.float32,
                precision=jax.lax.Precision.HIGHEST)
    y = y + p_ref[R_B3:R_B3 + 1, :]

    # Narrow store: only OUTPUT_DIM lanes go back to HBM.
    o_ref[...] = y[:, :OUTPUT_DIM]


def _round_up(n, m):
    return ((n + m - 1) // m) * m


def baseline_model_forward(x, param_slab, *, block_rows=2048):
    """x: (B, NUM_FEATURE) f32; param_slab: (SLAB_ROWS, SLAB_LANES) f32 from pack_params.

    block_rows: batch rows per grid step. 2048 keeps per-step VMEM ~6-8 MiB,
    safe under the 32 MiB scoped default on v5e/v6e/v7x. On v6e/v5e (128 MiB
    VMEM) it can be raised further (with vmem_limit_bytes) for very large B;
    on v7x (64 MiB physical) keep <= 4096. For v7x megacore, a grid with >= 2
    steps lets the "parallel" axis use both TensorCores.
    """
    B = x.shape[0]
    b_pad = _round_up(B, 8)                 # sublane-align the batch only
    if b_pad != B:
        x = jnp.pad(x, ((0, b_pad - B), (0, 0)))
    tb = min(block_rows, b_pad)             # rows per grid step (multiple of 8)
    grid = (pl.cdiv(b_pad, tb),)            # partial last block is fine (row-wise op)

    out = pl.pallas_call(
        mlp_kernel,
        out_shape=jax.ShapeDtypeStruct((b_pad, OUTPUT_DIM), jnp.float32),
        grid=grid,
        in_specs=[
            pl.BlockSpec((tb, NUM_FEATURE), lambda i: (i, 0)),         # x tile
            pl.BlockSpec((SLAB_ROWS, SLAB_LANES), lambda i: (0, 0)),   # weights resident
        ],
        out_specs=pl.BlockSpec((tb, OUTPUT_DIM), lambda i: (i, 0)),    # narrow output
        compiler_params=pltpu.CompilerParams(
            dimension_semantics=("parallel",)),   # megacore sharding on v7x; harmless elsewhere
    )(x, param_slab)
    return out if b_pad == B else out[:B]


def init_params(key):
    """Deterministic init mirroring nn.Linear's U(-1/sqrt(in), 1/sqrt(in))."""
    def linear(key, fan_in, fan_out):
        kw, kb = jax.random.split(key)
        bound = 1.0 / np.sqrt(fan_in)
        # stored as (in, out) so the model computes x @ W
        w = jax.random.uniform(kw, (fan_in, fan_out), jnp.float32, -bound, bound)
        b = jax.random.uniform(kb, (fan_out,), jnp.float32, -bound, bound)
        return w, b

    k1, k2, k3 = jax.random.split(key, 3)
    w1, b1 = linear(k1, NUM_FEATURE, HIDDEN)
    w2, b2 = linear(k2, HIDDEN, HIDDEN)
    w3, b3 = linear(k3, HIDDEN, OUTPUT_DIM)
    return (w1, b1, w2, b2, w3, b3)


def pack_params(params):
    """Pack all 6 parameter tensors into one zero-padded (264, 128) f32 slab (done once)."""
    w1, b1, w2, b2, w3, b3 = params
    slab = jnp.zeros((SLAB_ROWS, SLAB_LANES), jnp.float32)
    slab = slab.at[R_W1:R_W1 + NUM_FEATURE, :HIDDEN].set(w1)
    slab = slab.at[R_B1, :HIDDEN].set(b1)
    slab = slab.at[R_B2, :HIDDEN].set(b2)
    slab = slab.at[R_B3, :OUTPUT_DIM].set(b3)
    slab = slab.at[R_W2:R_W2 + HIDDEN, :HIDDEN].set(w2)       # MXU tile, rows>=10 zero
    slab = slab.at[R_W3:R_W3 + HIDDEN, :OUTPUT_DIM].set(w3)   # MXU tile, rows>=10 zero
    return slab


def reference_forward_np(x, params):
    """Host-side float64 reference (avoids TPU default-precision matmuls)."""
    w1, b1, w2, b2, w3, b3 = [np.asarray(p, np.float64) for p in params]
    x = np.asarray(x, np.float64)
    h1 = np.maximum(x @ w1 + b1, 0.0)
    h2 = np.maximum(h1 @ w2 + b2, 0.0)
    return h2 @ w3 + b3


if __name__ == "__main__":
    key = jax.random.PRNGKey(0)
    kx, kp = jax.random.split(key)
    BATCH = 8
    x = jax.random.normal(kx, (BATCH, NUM_FEATURE), jnp.float32)
    params = init_params(kp)
    slab = pack_params(params)

    out = baseline_model_forward(x, slab)
    out = jax.block_until_ready(out)

    ref = reference_forward_np(x, params)
    assert out.shape == (BATCH, OUTPUT_DIM)
    assert np.allclose(np.asarray(out, np.float64), ref, atol=1e-5, rtol=1e-5)

    print("KERNEL_OK")
</pallas_src>

<mosaic_0001>
module attributes {stable_mosaic.version = 11 : i64} {
  func.func @mlp_kernel(%arg0: i32, %arg1: memref<8x4xf32, #tpu.memory_space<vmem>>, %arg2: memref<264x128xf32, #tpu.memory_space<vmem>>, %arg3: memref<8x3xf32, #tpu.memory_space<vmem>>) attributes {dimension_semantics = [#tpu.dimension_semantics<parallel>], iteration_bounds = array<i64: 1>, scalar_prefetch = 0 : i64, scratch_operands = 0 : i64, tpu.core_type = #tpu.core_type<tc>, window_params = [{transform_indices = @transform_0, window_bounds = array<i64: 8, 4>}, {pipeline_mode = #tpu.pipeline_mode<synchronous>, transform_indices = @transform_1, window_bounds = array<i64: 264, 128>}, {transform_indices = @transform_2, window_bounds = array<i64: 8, 3>}]} {
    %c0 = arith.constant 0 : index
    %c0_0 = arith.constant 0 : index
    %0 = vector.load %arg1[%c0, %c0_0] : memref<8x4xf32, #tpu.memory_space<vmem>>, vector<8x4xf32>
    %c4 = arith.constant 4 : index
    %c0_1 = arith.constant 0 : index
    %1 = vector.load %arg2[%c4, %c0_1] : memref<264x128xf32, #tpu.memory_space<vmem>>, vector<1x128xf32>
    %2 = vector.shape_cast %1 : vector<1x128xf32> to vector<1x128xf32>
    %3 = vector.broadcast %2 : vector<1x128xf32> to vector<8x128xf32>
    %4 = vector.extract_strided_slice %0 {offsets = [0, 0], sizes = [8, 1], strides = [1, 1]} : vector<8x4xf32> to vector<8x1xf32>
    %c0_2 = arith.constant 0 : index
    %c0_3 = arith.constant 0 : index
    %5 = vector.load %arg2[%c0_2, %c0_3] : memref<264x128xf32, #tpu.memory_space<vmem>>, vector<1x128xf32>
    %6 = vector.broadcast %4 : vector<8x1xf32> to vector<8x128xf32>
    %7 = vector.broadcast %5 : vector<1x128xf32> to vector<8x128xf32>
    %8 = arith.mulf %6, %7 : vector<8x128xf32>
    %9 = arith.addf %3, %8 : vector<8x128xf32>
    %10 = vector.extract_strided_slice %0 {offsets = [0, 1], sizes = [8, 1], strides = [1, 1]} : vector<8x4xf32> to vector<8x1xf32>
    %c1 = arith.constant 1 : index
    %c0_4 = arith.constant 0 : index
    %11 = vector.load %arg2[%c1, %c0_4] : memref<264x128xf32, #tpu.memory_space<vmem>>, vector<1x128xf32>
    %12 = vector.broadcast %10 : vector<8x1xf32> to vector<8x128xf32>
    %13 = vector.broadcast %11 : vector<1x128xf32> to vector<8x128xf32>
    %14 = arith.mulf %12, %13 : vector<8x128xf32>
    %15 = arith.addf %9, %14 : vector<8x128xf32>
    %16 = vector.extract_strided_slice %0 {offsets = [0, 2], sizes = [8, 1], strides = [1, 1]} : vector<8x4xf32> to vector<8x1xf32>
    %c2 = arith.constant 2 : index
    %c0_5 = arith.constant 0 : index
    %17 = vector.load %arg2[%c2, %c0_5] : memref<264x128xf32, #tpu.memory_space<vmem>>, vector<1x128xf32>
    %18 = vector.broadcast %16 : vector<8x1xf32> to vector<8x128xf32>
    %19 = vector.broadcast %17 : vector<1x128xf32> to vector<8x128xf32>
    %20 = arith.mulf %18, %19 : vector<8x128xf32>
    %21 = arith.addf %15, %20 : vector<8x128xf32>
    %22 = vector.extract_strided_slice %0 {offsets = [0, 3], sizes = [8, 1], strides = [1, 1]} : vector<8x4xf32> to vector<8x1xf32>
    %c3 = arith.constant 3 : index
    %c0_6 = arith.constant 0 : index
    %23 = vector.load %arg2[%c3, %c0_6] : memref<264x128xf32, #tpu.memory_space<vmem>>, vector<1x128xf32>
    %24 = vector.broadcast %22 : vector<8x1xf32> to vector<8x128xf32>
    %25 = vector.broadcast %23 : vector<1x128xf32> to vector<8x128xf32>
    %26 = arith.mulf %24, %25 : vector<8x128xf32>
    %27 = arith.addf %21, %26 : vector<8x128xf32>
    %cst = arith.constant 0.000000e+00 : f32
    %28 = vector.broadcast %cst : f32 to vector<8x128xf32>
    %29 = arith.maximumf %27, %28 : vector<8x128xf32>
    %c8 = arith.constant 8 : index
    %c0_7 = arith.constant 0 : index
    %30 = vector.load %arg2[%c8, %c0_7] : memref<264x128xf32, #tpu.memory_space<vmem>>, vector<128x128xf32>
    %cst_8 = arith.constant dense<0.000000e+00> : vector<8x128xf32>
    %31 = tpu.matmul %29, %30, %cst_8 {dimension_numbers = #tpu.dot_dimension_numbers<[1], [0], [0], [1], [0, 0, 1, 1], [], []>, precision = #tpu.contract_precision<fp32>} : vector<8x128xf32>, vector<128x128xf32>, vector<8x128xf32> -> vector<8x128xf32>
    %c5 = arith.constant 5 : index
    %c0_9 = arith.constant 0 : index
    %32 = vector.load %arg2[%c5, %c0_9] : memref<264x128xf32, #tpu.memory_space<vmem>>, vector<1x128xf32>
    %33 = vector.broadcast %32 : vector<1x128xf32> to vector<8x128xf32>
    %34 = arith.addf %31, %33 : vector<8x128xf32>
    %cst_10 = arith.constant 0.000000e+00 : f32
    %35 = vector.broadcast %cst_10 : f32 to vector<8x128xf32>
    %36 = arith.maximumf %34, %35 : vector<8x128xf32>
    %c136 = arith.constant 136 : index
    %c0_11 = arith.constant 0 : index
    %37 = vector.load %arg2[%c136, %c0_11] : memref<264x128xf32, #tpu.memory_space<vmem>>, vector<128x128xf32>
    %cst_12 = arith.constant dense<0.000000e+00> : vector<8x128xf32>
    %38 = tpu.matmul %36, %37, %cst_12 {dimension_numbers = #tpu.dot_dimension_numbers<[1], [0], [0], [1], [0, 0, 1, 1], [], []>, precision = #tpu.contract_precision<fp32>} : vector<8x128xf32>, vector<128x128xf32>, vector<8x128xf32> -> vector<8x128xf32>
    %c6 = arith.constant 6 : index
    %c0_13 = arith.constant 0 : index
    %39 = vector.load %arg2[%c6, %c0_13] : memref<264x128xf32, #tpu.memory_space<vmem>>, vector<1x128xf32>
    %40 = vector.broadcast %39 : vector<1x128xf32> to vector<8x128xf32>
    %41 = arith.addf %38, %40 : vector<8x128xf32>
    %42 = vector.extract_strided_slice %41 {offsets = [0, 0], sizes = [8, 3], strides = [1, 1]} : vector<8x128xf32> to vector<8x3xf32>
    %c0_14 = arith.constant 0 : index
    %c0_15 = arith.constant 0 : index
    %43 = vector.load %arg3[%c0_14, %c0_15] : memref<8x3xf32, #tpu.memory_space<vmem>>, vector<8x3xf32>
    tpu.vector_store %arg3[%c0_14, %c0_15], %42 {strides = array<i32>} : memref<8x3xf32, #tpu.memory_space<vmem>>, vector<8x3xf32>,
    return
  }
  func.func @transform_0(%arg0: i32) -> (i32, i32) {
    %c0_i32 = arith.constant 0 : i32
    %c0_i32_0 = arith.constant 0 : i32
    return %arg0, %c0_i32 : i32, i32
  }
  func.func @transform_1(%arg0: i32) -> (i32, i32) {
    %c0_i32 = arith.constant 0 : i32
    %c0_i32_0 = arith.constant 0 : i32
    %c0_i32_1 = arith.constant 0 : i32
    return %c0_i32, %c0_i32_0 : i32, i32
  }
  func.func @transform_2(%arg0: i32) -> (i32, i32) {
    %c0_i32 = arith.constant 0 : i32
    %c0_i32_0 = arith.constant 0 : i32
    return %arg0, %c0_i32 : i32, i32
  }
}

</mosaic_0001>

<bundles_post_ra>
// kernel: tpu_custom_call.1
= control target key start
LH: loop header
LB: loop body
LE: loop exit
PB: predicated region body
PF: predicated region fallthrough
CT: control target
= control target key end

     0   :  { %7 = vsyncpa [#allocation3], 0  ;;  %s835_s12 = smov [#allocation2]   ;;  %s836_s14 = smov 128   ;;  %s1331_s0 = inlined_call_operand.vmem [shape: f32[8,4], index: 0, kind: input, shape index: {}]   ;;  %s1332_s1 = inlined_call_operand.hbm [shape: f32[264,128], index: 1, kind: input, shape index: {}]   ;;  %s1333_s2 = inlined_call_operand.vmem [shape: f32[8,3], index: 2, kind: output, shape index: {}]  }
   0x1   :  { %s14_s11 = sshll.u32 %s1332_s1, 4  ;;  %s16_s13 = sshll.u32 %s835_s12, 4  ;;  %s15_s11 = int_to_ptr.hbm [resolvable:$true] %s14_s11  ;;  %s17_s13 = int_to_ptr.vmem [resolvable:$true] %s16_s13 }
   0x2   :  { %s837_s15 = smov 8  }
   0x3   :  { %22 = dma.hbm_to_vmem [thread:$0]  %s15_s11, 4224, %s17_s13, [#allocation3], %s836_s14, %s836_s14, %s837_s15  }
   0x4   :  { %833 = dma.done.wait [#allocation3], 4224  }
   0x5   :  { %834 = vsyncadd [#allocation3], 4294963072  ;;  %v838_v0 = vmov 0   ;;  %v839_v1 = vmov 2   ;;  %v27_v2 = vld [vmem:[%s1331_s0] sm:$0xff]  ;;  %v78_v4 = vld [vmem:[#allocation2 + $0x78] sm:$0xff] }
   0x6   :  { %797 = vset.pattern.permute.xlu0 %v838_v0  ;;  %799 = vset.pattern.permute.xlu1 %v839_v1  ;;  %v79_v3 = vld [vmem:[#allocation2 + $0x80] sm:$0xff]  ;;  %v865_v6 = vand.u32 4294901760, %v78_v4  ;;  %v77_v7 = vld [vmem:[#allocation2 + $0x70] sm:$0xff]  ;;  %v76_v8 = vld [vmem:[#allocation2 + $0x68] sm:$0xff]  ;;  %v840_v39 = vmov 1   ;;  %v841_v40 = vmov 3  }
   0x7   :  { %33 = vperm.xlu0 %797, %v27_v2   ;;  %49 = vperm.xlu1 %799, %v27_v2   ;;  %v863_v5 = vand.u32 4294901760, %v79_v3  ;;  %v75_v9 = vld [vmem:[#allocation2 + $0x60] sm:$0xff]  ;;  %v867_v10 = vand.u32 4294901760, %v77_v7  ;;  %v869_v11 = vand.u32 4294901760, %v76_v8  ;;  %v74_v13 = vld [vmem:[#allocation2 + $0x58] sm:$0xff]  ;;  %v73_v14 = vld [vmem:[#allocation2 + $0x50] sm:$0xff] }
   0x8   :  { %v871_v12 = vand.u32 4294901760, %v75_v9  ;;  %v72_v15 = vld [vmem:[#allocation2 + $0x48] sm:$0xff]  ;;  %v877_v17 = vsub.f32 %v78_v4, %v865_v6  ;;  %v880_v18 = vand.u32 4294901760, %v74_v13  ;;  %v882_v19 = vand.u32 4294901760, %v73_v14  ;;  %v71_v33 = vld [vmem:[#allocation2 + $0x40] sm:$0xff]  ;;  %v70_v34 = vld [vmem:[#allocation2 + $0x38] sm:$0xff] }
   0x9   :  { %v874_v16 = vsub.f32 %v79_v3, %v863_v5  ;;  %83 = vmatpush.msra.mxu0 %v863_v5  ;;  %279 = vmatpush.msra.mxu3 %v863_v5  ;;  %v886_v20 = vsub.f32 %v77_v7, %v867_v10  ;;  %v889_v21 = vsub.f32 %v76_v8, %v869_v11  ;;  %v894_v23 = vand.u32 4294901760, %v72_v15  ;;  %v69_v38 = vld [vmem:[#allocation2 + $0x30] sm:$0xff]  ;;  %v68_v45 = vld [vmem:[#allocation2 + $0x28] sm:$0xff]  ;;  %v67_v53 = vld [vmem:[#allocation2 + $0x20] sm:$0xff] }
   0xa   :  { %v892_v22 = vsub.f32 %v75_v9, %v871_v12  ;;  %v131_v25 = vand.u32 4294901760, %v877_v17  ;;  %v900_v26 = vsub.f32 %v74_v13, %v880_v18  ;;  %v906_v29 = vsub.f32 %v73_v14, %v882_v19  ;;  %v66_v59 = vld [vmem:[#allocation2 + $0x18] sm:$0xff]  ;;  %v65_v1 = vld [vmem:[#allocation2 + $0x10] sm:$0xff]  ;;  %v64_v9 = vld [vmem:[#allocation2 + $0x8] sm:$0xff] }
   0xb   :  { %v125_v24 = vand.u32 4294901760, %v874_v16  ;;  %85 = vmatpush.msra.mxu0 %v865_v6  ;;  %226 = vmatpush.msra.mxu2 %v874_v16  ;;  %v137_v27 = vand.u32 4294901760, %v886_v20  ;;  %v143_v28 = vand.u32 4294901760, %v889_v21  ;;  %v923_v37 = vsub.f32 %v72_v15, %v894_v23 }
   0xc   :  { %281 = vmatpush.msra.mxu3 %v865_v6  ;;  %v132_v31 = vsub.f32 %v877_v17, %v131_v25  ;;  %v149_v32 = vand.u32 4294901760, %v892_v22  ;;  %v155_v36 = vand.u32 4294901760, %v900_v26  ;;  %v161_v44 = vand.u32 4294901760, %v906_v29 }
   0xd   :  { %v126_v30 = vsub.f32 %v874_v16, %v125_v24  ;;  %87 = vmatpush.msra.mxu0 %v867_v10  ;;  %229 = vmatpush.msra.mxu2 %v877_v17  ;;  %v138_v35 = vsub.f32 %v886_v20, %v137_v27  ;;  %v144_v43 = vsub.f32 %v889_v21, %v143_v28  ;;  %v935_v48 = vand.u32 4294901760, %v71_v33  ;;  %v805_v17 = vld [vmem:[#allocation2 + $0x1] ss:$0 sm:$0xff] }
   0xe   :  { %283 = vmatpush.msra.mxu3 %v867_v10  ;;  %v133_v42 = vand.u32 4294901760, %v132_v31  ;;  %v150_v47 = vsub.f32 %v892_v22, %v149_v32  ;;  %v937_v49 = vand.u32 4294901760, %v70_v34  ;;  %v156_v50 = vsub.f32 %v900_v26, %v155_v36 }
   0xf   :  { %798 = vset.pattern.permute.xlu0 %v840_v39  ;;  %800 = vset.pattern.permute.xlu1 %v841_v40  ;;  %v127_v41 = vand.u32 4294901760, %v126_v30  ;;  %v139_v46 = vand.u32 4294901760, %v138_v35  ;;  %v167_v51 = vand.u32 4294901760, %v923_v37  ;;  %v943_v52 = vand.u32 4294901760, %v69_v38 }
  0x10   :  { %41 = vperm.xlu0 %798, %v27_v2   ;;  %57 = vperm.xlu1 %800, %v27_v2   ;;  %v145_v54 = vand.u32 4294901760, %v144_v43  ;;  %v949_v55 = vsub.f32 %v71_v33, %v935_v48  ;;  %v952_v56 = vsub.f32 %v70_v34, %v937_v49  ;;  %v954_v57 = vand.u32 4294901760, %v68_v45 }
  0x11   :  { %128 = vmatpush.msra.mxu1 %v127_v41  ;;  %89 = vmatpush.msra.mxu0 %v869_v11  ;;  %v162_v58 = vsub.f32 %v906_v29, %v161_v44  ;;  %v151_v60 = vand.u32 4294901760, %v150_v47  ;;  %v964_v62 = vsub.f32 %v69_v38, %v943_v52  ;;  %v966_v63 = vand.u32 4294901760, %v67_v53 }
  0x12   :  { %232 = vmatpush.msra.mxu2 %v886_v20  ;;  %285 = vmatpush.msra.mxu3 %v869_v11  ;;  %v173_v61 = vand.u32 4294901760, %v949_v55  ;;  %v168_v0 = vsub.f32 %v923_v37, %v167_v51  ;;  %v157_v2 = vand.u32 4294901760, %v156_v50  ;;  %v179_v3 = vand.u32 4294901760, %v952_v56  ;;  %v438_v20 = vld [vmem:[#allocation2 + $0xf8] sm:$0xff] }
  0x13   :  { %134 = vmatpush.msra.mxu1 %v133_v42  ;;  %91 = vmatpush.msra.mxu0 %v871_v12  ;;  %v976_v4 = vsub.f32 %v68_v45, %v954_v57  ;;  %v978_v7 = vand.u32 4294901760, %v66_v59  ;;  %v163_v8 = vand.u32 4294901760, %v162_v58  ;;  %v185_v14 = vand.u32 4294901760, %v964_v62 }
  0x14   :  { %235 = vmatpush.msra.mxu2 %v889_v21  ;;  %287 = vmatpush.msra.mxu3 %v871_v12  ;;  %v174_v13 = vsub.f32 %v949_v55, %v173_v61  ;;  %v988_v15 = vsub.f32 %v67_v53, %v966_v63  ;;  %v990_v30 = vand.u32 4294901760, %v65_v1  ;;  %v169_v31 = vand.u32 4294901760, %v168_v0  ;;  %v437_v21 = vld [vmem:[#allocation2 + $0xf0] sm:$0xff] }
  0x15   :  { %140 = vmatpush.msra.mxu1 %v139_v46  ;;  %93 = vmatpush.msra.mxu0 %v880_v18  ;;  %v180_v33 = vsub.f32 %v952_v56, %v179_v3  ;;  %v191_v34 = vand.u32 4294901760, %v976_v4  ;;  %v1000_v35 = vsub.f32 %v66_v59, %v978_v7  ;;  %v1002_v38 = vand.u32 4294901760, %v64_v9 }
  0x16   :  { %238 = vmatpush.msra.mxu2 %v892_v22  ;;  %289 = vmatpush.msra.mxu3 %v880_v18  ;;  %v175_v39 = vand.u32 4294901760, %v174_v13  ;;  %v186_v41 = vsub.f32 %v964_v62, %v185_v14  ;;  %v197_v42 = vand.u32 4294901760, %v988_v15  ;;  %v1012_v43 = vsub.f32 %v65_v1, %v990_v30 }
  0x17   :  { %146 = vmatpush.msra.mxu1 %v145_v54  ;;  %95 = vmatpush.msra.mxu0 %v882_v19  ;;  %v181_v45 = vand.u32 4294901760, %v180_v33  ;;  %v192_v46 = vsub.f32 %v976_v4, %v191_v34  ;;  %v203_v47 = vand.u32 4294901760, %v1000_v35  ;;  %v1022_v50 = vsub.f32 %v64_v9, %v1002_v38 }
  0x18   :  { %241 = vmatpush.msra.mxu2 %v900_v26  ;;  %291 = vmatpush.msra.mxu3 %v882_v19  ;;  %v187_v53 = vand.u32 4294901760, %v186_v41  ;;  %v198_v54 = vsub.f32 %v988_v15, %v197_v42  ;;  %v209_v58 = vand.u32 4294901760, %v1012_v43  ;;  %v436_v26 = vld [vmem:[#allocation2 + $0xe8] sm:$0xff]  ;;  %vm783_vm0 = vcmask 23552  }
  0x19   :  { %152 = vmatpush.msra.mxu1 %v151_v60  ;;  %97 = vmatpush.msra.mxu0 %v894_v23  ;;  %v193_v59 = vand.u32 4294901760, %v192_v46  ;;  %v204_v60 = vsub.f32 %v1000_v35, %v203_v47  ;;  %v215_v0 = vand.u32 4294901760, %v1022_v50 }
  0x1a   :  { %244 = vmatpush.msra.mxu2 %v906_v29  ;;  %293 = vmatpush.msra.mxu3 %v894_v23  ;;  %v199_v1 = vand.u32 4294901760, %v198_v54  ;;  %v428_v54 = vld [vmem:[#allocation2 + $0xa8] sm:$0xff] }
  0x1b   :  { %158 = vmatpush.msra.mxu1 %v157_v2  ;;  %99 = vmatpush.msra.mxu0 %v935_v48  ;;  %v210_v2 = vsub.f32 %v1012_v43, %v209_v58  ;;  %v216_v9 = vsub.f32 %v1022_v50, %v215_v0 }
  0x1c   :  { %247 = vmatpush.msra.mxu2 %v923_v37  ;;  %295 = vmatpush.msra.mxu3 %v935_v48 }
  0x1d   :  { %164 = vmatpush.msra.mxu1 %v163_v8  ;;  %101 = vmatpush.msra.mxu0 %v937_v49  ;;  %v205_v8 = vand.u32 4294901760, %v204_v60  ;;  %v211_v13 = vand.u32 4294901760, %v210_v2 }
  0x1e   :  { %250 = vmatpush.msra.mxu2 %v949_v55  ;;  %297 = vmatpush.msra.mxu3 %v937_v49 }
  0x1f   :  { %170 = vmatpush.msra.mxu1 %v169_v31  ;;  %103 = vmatpush.msra.mxu0 %v943_v52  ;;  %v217_v31 = vand.u32 4294901760, %v216_v9 }
  0x20   :  { %253 = vmatpush.msra.mxu2 %v952_v56  ;;  %299 = vmatpush.msra.mxu3 %v943_v52 }
  0x21   :  { %176 = vmatpush.msra.mxu1 %v175_v39  ;;  %105 = vmatpush.msra.mxu0 %v954_v57 }
  0x22   :  { %256 = vmatpush.msra.mxu2 %v964_v62  ;;  %301 = vmatpush.msra.mxu3 %v954_v57 }
  0x23   :  { %182 = vmatpush.msra.mxu1 %v181_v45  ;;  %107 = vmatpush.msra.mxu0 %v966_v63  ;;  %v430_v45 = vld [vmem:[#allocation2 + $0xb8] sm:$0xff] }
  0x24   :  { %259 = vmatpush.msra.mxu2 %v976_v4  ;;  %303 = vmatpush.msra.mxu3 %v966_v63 }
  0x25   :  { %188 = vmatpush.msra.mxu1 %v187_v53  ;;  %109 = vmatpush.msra.mxu0 %v978_v7  ;;  %v429_v53 = vld [vmem:[#allocation2 + $0xb0] sm:$0xff] }
  0x26   :  { %262 = vmatpush.msra.mxu2 %v988_v15  ;;  %305 = vmatpush.msra.mxu3 %v978_v7 }
  0x27   :  { %194 = vmatpush.msra.mxu1 %v193_v59  ;;  %111 = vmatpush.msra.mxu0 %v990_v30 }
  0x28   :  { %265 = vmatpush.msra.mxu2 %v1000_v35  ;;  %307 = vmatpush.msra.mxu3 %v990_v30 }
  0x29   :  { %200 = vmatpush.msra.mxu1 %v199_v1  ;;  %113 = vmatpush.msra.mxu0 %v1002_v38 }
  0x2a   :  { %268 = vmatpush.msra.mxu2 %v1012_v43  ;;  %309 = vmatpush.msra.mxu3 %v1002_v38  ;;  %v431_v43 = vld [vmem:[#allocation2 + $0xc0] sm:$0xff] }
  0x2b   :  { %320 = vmatpush.msrb.mxu0 %v125_v24  ;;  %206 = vmatpush.msra.mxu1 %v205_v8  ;;  %v1099_v24 = vand.u32 4294901760, %v438_v20  ;;  %v1161_v2 = vand.u32 4294901760, %v431_v43  ;;  %v1163_v8 = vand.u32 4294901760, %v430_v45 }
  0x2c   :  { %271 = vmatpush.msra.mxu2 %v1022_v50  ;;  %801 = vset.pattern.permute.xlu0 %v841_v40  ;;  %v433_v40 = vld [vmem:[#allocation2 + $0xd0] sm:$0xff] }
  0x2d   :  { %324 = vmatpush.msrb.mxu0 %v131_v25  ;;  %212 = vmatpush.msra.mxu1 %v211_v13  ;;  %v1101_v25 = vand.u32 4294901760, %v437_v21  ;;  %v1119_v55 = vand.u32 4294901760, %v433_v40 }
  0x2f   :  { %328 = vmatpush.msrb.mxu0 %v137_v27  ;;  %218 = vmatpush.msra.mxu1 %v217_v31  ;;  %v435_v27 = vld [vmem:[#allocation2 + $0xe0] sm:$0xff]  ;;  %v1137_v33 = vsub.f32 %v433_v40, %v1119_v55  ;;  %v1168_v31 = vand.u32 4294901760, %v429_v53 }
  0x31   :  { %387 = vmatpush.msrb.mxu1 %v863_v5  ;;  %332 = vmatpush.msrb.mxu0 %v143_v28  ;;  %v803_v5 = vld [vmem:[#allocation2] ss:$0 sm:$0xff]  ;;  %v434_v28 = vld [vmem:[#allocation2 + $0xd8] sm:$0xff]  ;;  %v521_v60 = vand.u32 4294901760, %v1137_v33 }
  0x32   :  { %v1107_v37 = vand.u32 4294901760, %v434_v28 }
  0x33   :  { %389 = vmatpush.msrb.mxu1 %v865_v6  ;;  %336 = vmatpush.msrb.mxu0 %v149_v32  ;;  %v1103_v32 = vand.u32 4294901760, %v436_v26 }
  0x35   :  { %391 = vmatpush.msrb.mxu1 %v867_v10  ;;  %340 = vmatpush.msrb.mxu0 %v155_v36  ;;  %v1105_v36 = vand.u32 4294901760, %v435_v27 }
  0x37   :  { %393 = vmatpush.msrb.mxu1 %v869_v11  ;;  %344 = vmatpush.msrb.mxu0 %v161_v44  ;;  %v804_v11 = vld [vmem:[#allocation2 + $0x2] ss:$0 sm:$0xff]  ;;  %v1125_v62 = vsub.f32 %v435_v27, %v1105_v36 }
  0x39   :  { %395 = vmatpush.msrb.mxu1 %v871_v12  ;;  %348 = vmatpush.msrb.mxu0 %v167_v51  ;;  %v802_v12 = vld [vmem:[#allocation2 + $0x4] ss:$0 sm:$0xff]  ;;  %v1113_v51 = vsub.f32 %v438_v20, %v1099_v24  ;;  %v426_v20 = vld [vmem:[#allocation2 + $0x98] sm:$0xff] }
  0x3b   :  { %397 = vmatpush.msrb.mxu1 %v880_v18  ;;  %352 = vmatpush.msrb.mxu0 %v173_v61  ;;  %v806_v18 = vld [vmem:[#allocation2 + $0x3] ss:$0 sm:$0xff]  ;;  %v1122_v61 = vsub.f32 %v436_v26, %v1103_v32  ;;  %v1191_v26 = vsub.f32 %v429_v53, %v1168_v31 }
  0x3d   :  { %399 = vmatpush.msrb.mxu1 %v882_v19  ;;  %356 = vmatpush.msrb.mxu0 %v179_v3  ;;  %v439_v19 = vld [vmem:[#allocation2 + $0x100] sm:$0xff]  ;;  %v491_v3 = vand.u32 4294901760, %v1113_v51  ;;  %v503_v15 = vand.u32 4294901760, %v1122_v61 }
  0x3f   :  { %401 = vmatpush.msrb.mxu1 %v894_v23  ;;  %360 = vmatpush.msrb.mxu0 %v185_v14  ;;  %v1097_v23 = vand.u32 4294901760, %v439_v19  ;;  %v492_v35 = vsub.f32 %v1113_v51, %v491_v3  ;;  %v504_v50 = vsub.f32 %v1122_v61, %v503_v15 }
  0x41   :  { %403 = vmatpush.msrb.mxu1 %v935_v48  ;;  %364 = vmatpush.msrb.mxu0 %v191_v34 }
  0x42   :  { %443 = vmatpush.msrb.mxu2 %v1097_v23 }
  0x43   :  { %405 = vmatpush.msrb.mxu1 %v937_v49  ;;  %368 = vmatpush.msrb.mxu0 %v197_v42  ;;  %v1110_v49 = vsub.f32 %v439_v19, %v1097_v23  ;;  %v432_v42 = vld [vmem:[#allocation2 + $0xc8] sm:$0xff]  ;;  %v522_v19 = vsub.f32 %v1137_v33, %v521_v60 }
  0x44   :  { %445 = vmatpush.msrb.mxu2 %v1099_v24  ;;  %v1158_v1 = vand.u32 4294901760, %v432_v42 }
  0x45   :  { %407 = vmatpush.msrb.mxu1 %v943_v52  ;;  %372 = vmatpush.msrb.mxu0 %v203_v47  ;;  %v1116_v52 = vsub.f32 %v437_v21, %v1101_v25  ;;  %v493_v47 = vand.u32 4294901760, %v492_v35 }
  0x46   :  { %447 = vmatpush.msrb.mxu2 %v1101_v25 }
  0x47   :  { %409 = vmatpush.msrb.mxu1 %v954_v57  ;;  %376 = vmatpush.msrb.mxu0 %v209_v58  ;;  %v497_v4 = vand.u32 4294901760, %v1116_v52 }
  0x48   :  { %449 = vmatpush.msrb.mxu2 %v1103_v32 }
  0x49   :  { %411 = vmatpush.msrb.mxu1 %v966_v63  ;;  %380 = vmatpush.msrb.mxu0 %v215_v0  ;;  %v485_v63 = vand.u32 4294901760, %v1110_v49 }
  0x4a   :  { %451 = vmatpush.msrb.mxu2 %v1105_v36 }
  0x4b   :  { %413 = vmatpush.msrb.mxu1 %v978_v7  ;;  %v1132_v7 = vsub.f32 %v434_v28, %v1107_v37  ;;  %v486_v34 = vsub.f32 %v1110_v49, %v485_v63 }
  0x4c   :  { %453 = vmatpush.msrb.mxu2 %v1107_v37 }
  0x4d   :  { %415 = vmatpush.msrb.mxu1 %v990_v30  ;;  %v509_v30 = vand.u32 4294901760, %v1125_v62  ;;  %v515_v41 = vand.u32 4294901760, %v1132_v7  ;;  %v487_v46 = vand.u32 4294901760, %v486_v34  ;;  %v523_v34 = vand.u32 4294901760, %v522_v19 }
  0x4e   :  { %455 = vmatpush.msrb.mxu2 %v1119_v55 }
  0x4f   :  { %417 = vmatpush.msrb.mxu1 %v1002_v38  ;;  %v498_v38 = vsub.f32 %v1116_v52, %v497_v4  ;;  %v510_v59 = vsub.f32 %v1125_v62, %v509_v30  ;;  %488 = vmatpush.msrb.mxu3 %v487_v46  ;;  %v516_v13 = vsub.f32 %v1132_v7, %v515_v41 }
  0x50   :  { %457 = vmatpush.msrb.mxu2 %v1158_v1 }
  0x51   :  { %v499_v0 = vand.u32 4294901760, %v498_v38  ;;  %494 = vmatpush.msrb.mxu3 %v493_v47  ;;  %v517_v40 = vand.u32 4294901760, %v516_v13  ;;  %v545_v38 = vand.u32 4294901760, %v1191_v26 }
  0x52   :  { %459 = vmatpush.msrb.mxu2 %v1161_v2 }
  0x53   :  { %500 = vmatpush.msrb.mxu3 %v499_v0 }
  0x54   :  { %461 = vmatpush.msrb.mxu2 %v1163_v8 }
  0x56   :  { %463 = vmatpush.msrb.mxu2 %v1168_v31 }
  0x79   :  { %v34_v6 = vpop.permute.xlu0 %33  ;;  %v50_v10 = vpop.permute.xlu1 %49 }
  0x7a   :  { %v37_v16 = vmul.f32 %v803_v5, %v34_v6  ;;  %v53_v22 = vmul.f32 %v804_v11, %v50_v10  ;;  %v1170_v5 = vand.u32 4294901760, %v428_v54  ;;  %v427_v6 = vld [vmem:[#allocation2 + $0xa0] sm:$0xff]  ;;  %v505_v10 = vand.u32 4294901760, %v504_v50 }
  0x7b   :  { %v1173_v11 = vsub.f32 %v432_v42, %v1158_v1  ;;  %v1193_v27 = vand.u32 4294901760, %v427_v6 }
  0x7c   :  { %v38_v29 = vadd.f32 %v802_v12, %v37_v16  ;;  %v1176_v12 = vsub.f32 %v431_v43, %v1161_v2  ;;  %v1180_v16 = vsub.f32 %v430_v45, %v1163_v8  ;;  %506 = vmatpush.msrb.mxu3 %v505_v10  ;;  %465 = vmatpush.msrb.mxu2 %v1170_v5 }
  0x7d   :  { %v527_v21 = vand.u32 4294901760, %v1173_v11 }
  0x7e   :  { %467 = vmatpush.msrb.mxu2 %v1193_v27 }
  0x82   :  { %v42_v44 = vpop.permute.xlu0 %41  ;;  %v58_v48 = vpop.permute.xlu1 %57 }
  0x83   :  { %v45_v56 = vmul.f32 %v805_v17, %v42_v44  ;;  %v61_v57 = vmul.f32 %v806_v18, %v58_v48  ;;  %v511_v18 = vand.u32 4294901760, %v510_v59  ;;  %v528_v44 = vsub.f32 %v1173_v11, %v527_v21 }
  0x84   :  { %v539_v48 = vand.u32 4294901760, %v1180_v16 }
  0x85   :  { %v46_v14 = vadd.f32 %v45_v56, %v38_v29  ;;  %v1198_v29 = vsub.f32 %v428_v54, %v1170_v5  ;;  %v1205_v56 = vand.u32 4294901760, %v426_v20  ;;  %512 = vmatpush.msrb.mxu3 %v511_v18  ;;  %v529_v45 = vand.u32 4294901760, %v528_v44 }
  0x86   :  { %v540_v46 = vsub.f32 %v1180_v16, %v539_v48 }
  0x87   :  { %v54_v39 = vadd.f32 %v53_v22, %v46_v14  ;;  %v533_v22 = vand.u32 4294901760, %v1176_v12  ;;  %v425_v14 = vld [vmem:[#allocation2 + $0x90] sm:$0xff]  ;;  %v551_v43 = vand.u32 4294901760, %v1198_v29  ;;  %518 = vmatpush.msrb.mxu3 %v517_v40  ;;  %v1223_v47 = vsub.f32 %v426_v20, %v1205_v56  ;;  %469 = vmatpush.msrb.mxu2 %v1205_v56 }
  0x88   :  { %v1225_v50 = vand.u32 4294901760, %v425_v14 }
  0x89   :  { %v62_v58 = vadd.f32 %v61_v57, %v54_v39  ;;  %v534_v35 = vsub.f32 %v1176_v12, %v533_v22  ;;  %v1214_v39 = vsub.f32 %v427_v6, %v1193_v27  ;;  %524 = vmatpush.msrb.mxu3 %v523_v34  ;;  %v552_v13 = vsub.f32 %v1198_v29, %v551_v43 }
  0x8a   :  { %v1234_v0 = vsub.f32 %v425_v14, %v1225_v50  ;;  %v563_v6 = vand.u32 4294901760, %v1223_v47  ;;  %471 = vmatpush.msrb.mxu2 %v1225_v50 }
  0x8b   :  { %v63_v9 = vmax.f32 %v62_v58, 0.0  ;;  %v535_v54 = vand.u32 4294901760, %v534_v35  ;;  %v546_v58 = vsub.f32 %v1191_v26, %v545_v38  ;;  %v557_v59 = vand.u32 4294901760, %v1214_v39  ;;  %530 = vmatpush.msrb.mxu3 %v529_v45 }
  0x8c   :  { %v569_v19 = vand.u32 4294901760, %v1234_v0  ;;  %v553_v20 = vand.u32 4294901760, %v552_v13 }
  0x8d   :  { %v1182_v17 = vand.u32 4294901760, %v63_v9  ;;  %536 = vmatpush.msrb.mxu3 %v535_v54  ;;  %v547_v10 = vand.u32 4294901760, %v546_v58  ;;  %v558_v18 = vsub.f32 %v1214_v39, %v557_v59 }
  0x8e   :  { %v570_v44 = vsub.f32 %v1234_v0, %v569_v19 }
  0x8f   :  { %220 = vmatmul.f32.vlgmr.msra.gmra.mxu1 %v1182_v17  ;;  %v115_v28 = vsub.f32 %v63_v9, %v1182_v17  ;;  %v541_v9 = vand.u32 4294901760, %v540_v46  ;;  %v559_v40 = vand.u32 4294901760, %v558_v18 }
  0x90   :  { %639 = vmatpush.msra.mxu1 %v1097_v23  ;;  %v571_v14 = vand.u32 4294901760, %v570_v44 }
  0x91   :  { %274 = vmatmul.f32.vlgmr.msra.gmra.mxu2 %v115_v28  ;;  %v116_v57 = vand.u32 4294901760, %v115_v28  ;;  %542 = vmatpush.msrb.mxu3 %v541_v9 }
  0x92   :  { %641 = vmatpush.msra.mxu1 %v1099_v24 }
  0x93   :  { %313 = vmatmul.f32.vlgmr.msra.gmra.mxu3 %v116_v57  ;;  %v117_v42 = vsub.f32 %v115_v28, %v116_v57  ;;  %v564_v28 = vsub.f32 %v1223_v47, %v563_v6 }
  0x94   :  { %643 = vmatpush.msra.mxu1 %v1101_v25  ;;  %548 = vmatpush.msrb.mxu3 %v547_v10 }
  0x95   :  { %v118_v53 = vand.u32 4294901760, %v117_v42  ;;  %v565_v57 = vand.u32 4294901760, %v564_v28 }
  0x96   :  { %645 = vmatpush.msra.mxu1 %v1103_v32  ;;  %554 = vmatpush.msrb.mxu3 %v553_v20 }
  0x97   :  { %119 = vmatmul.f32.vlgmr.msra.gmra.mxu0 %v118_v53  ;;  %419 = vmatmul.f32.vlgmr.msrb.gmra.mxu1 %v1182_v17 }
  0x98   :  { %586 = vmatpush.msra.mxu0 %v1110_v49  ;;  %647 = vmatpush.msra.mxu1 %v1105_v36 }
  0x99   :  { %560 = vmatpush.msrb.mxu3 %v559_v40 }
  0x9a   :  { %589 = vmatpush.msra.mxu0 %v1113_v51  ;;  %649 = vmatpush.msra.mxu1 %v1107_v37 }
  0x9b   :  { %566 = vmatpush.msrb.mxu3 %v565_v57 }
  0x9c   :  { %592 = vmatpush.msra.mxu0 %v1116_v52  ;;  %651 = vmatpush.msra.mxu1 %v1119_v55 }
  0x9d   :  { %572 = vmatpush.msrb.mxu3 %v571_v14 }
  0x9e   :  { %595 = vmatpush.msra.mxu0 %v1122_v61  ;;  %653 = vmatpush.msra.mxu1 %v1158_v1 }
  0x9f   :  { %382 = vmatmul.f32.vlgmr.msrb.gmra.mxu0 %v1182_v17  ;;  %v424_v17 = vld [vmem:[#allocation2 + $0x88] sm:$0xff] }
  0xa0   :  { %598 = vmatpush.msra.mxu0 %v1125_v62  ;;  %655 = vmatpush.msra.mxu1 %v1161_v2  ;;  %v472_v34 = vand.u32 4294901760, %v424_v17 }
  0xa2   :  { %601 = vmatpush.msra.mxu0 %v1132_v7  ;;  %657 = vmatpush.msra.mxu1 %v1163_v8  ;;  %v574_v35 = vsub.f32 %v424_v17, %v472_v34 }
  0xa3   :  { %473 = vmatpush.msrb.mxu2 %v472_v34 }
  0xa4   :  { %604 = vmatpush.msra.mxu0 %v1137_v33  ;;  %659 = vmatpush.msra.mxu1 %v1168_v31  ;;  %v575_v42 = vand.u32 4294901760, %v574_v35 }
  0xa5   :  { %680 = vmatpush.msra.mxu2 %v485_v63 }
  0xa6   :  { %607 = vmatpush.msra.mxu0 %v1173_v11  ;;  %661 = vmatpush.msra.mxu1 %v1170_v5  ;;  %v576_v45 = vsub.f32 %v574_v35, %v575_v42 }
  0xa7   :  { %684 = vmatpush.msra.mxu2 %v491_v3 }
  0xa8   :  { %610 = vmatpush.msra.mxu0 %v1176_v12  ;;  %663 = vmatpush.msra.mxu1 %v1193_v27  ;;  %v577_v46 = vand.u32 4294901760, %v576_v45 }
  0xa9   :  { %688 = vmatpush.msra.mxu2 %v497_v4 }
  0xaa   :  { %613 = vmatpush.msra.mxu0 %v1180_v16  ;;  %665 = vmatpush.msra.mxu1 %v1205_v56 }
  0xab   :  { %692 = vmatpush.msra.mxu2 %v503_v15  ;;  %578 = vmatpush.msrb.mxu3 %v577_v46 }
  0xac   :  { %616 = vmatpush.msra.mxu0 %v1191_v26  ;;  %667 = vmatpush.msra.mxu1 %v1225_v50 }
  0xad   :  { %747 = vmatpush.msra.mxu3 %v1097_v23  ;;  %696 = vmatpush.msra.mxu2 %v509_v30  ;;  %v807_v23 = vld [vmem:[#allocation2 + $0x5] ss:$0 sm:$0xff] }
  0xae   :  { %619 = vmatpush.msra.mxu0 %v1198_v29  ;;  %669 = vmatpush.msra.mxu1 %v472_v34 }
  0xaf   :  { %749 = vmatpush.msra.mxu3 %v1099_v24  ;;  %700 = vmatpush.msra.mxu2 %v515_v41  ;;  %v808_v41 = vld [vmem:[#allocation2 + $0x6] ss:$0 sm:$0xff] }
  0xb0   :  { %622 = vmatpush.msra.mxu0 %v1214_v39 }
  0xb1   :  { %751 = vmatpush.msra.mxu3 %v1101_v25  ;;  %704 = vmatpush.msra.mxu2 %v521_v60 }
  0xb2   :  { %625 = vmatpush.msra.mxu0 %v1223_v47 }
  0xb3   :  { %753 = vmatpush.msra.mxu3 %v1103_v32  ;;  %708 = vmatpush.msra.mxu2 %v527_v21 }
  0xb4   :  { %628 = vmatpush.msra.mxu0 %v1234_v0 }
  0xb5   :  { %755 = vmatpush.msra.mxu3 %v1105_v36  ;;  %712 = vmatpush.msra.mxu2 %v533_v22 }
  0xb6   :  { %631 = vmatpush.msra.mxu0 %v574_v35 }
  0xb7   :  { %757 = vmatpush.msra.mxu3 %v1107_v37  ;;  %716 = vmatpush.msra.mxu2 %v539_v48 }
  0xb9   :  { %759 = vmatpush.msra.mxu3 %v1119_v55  ;;  %720 = vmatpush.msra.mxu2 %v545_v38 }
  0xbb   :  { %761 = vmatpush.msra.mxu3 %v1158_v1  ;;  %724 = vmatpush.msra.mxu2 %v551_v43 }
  0xbd   :  { %763 = vmatpush.msra.mxu3 %v1161_v2  ;;  %728 = vmatpush.msra.mxu2 %v557_v59 }
  0xbf   :  { %765 = vmatpush.msra.mxu3 %v1163_v8  ;;  %732 = vmatpush.msra.mxu2 %v563_v6 }
  0xc1   :  { %767 = vmatpush.msra.mxu3 %v1168_v31  ;;  %736 = vmatpush.msra.mxu2 %v569_v19 }
  0xc3   :  { %769 = vmatpush.msra.mxu3 %v1170_v5  ;;  %740 = vmatpush.msra.mxu2 %v575_v42 }
  0xc5   :  { %771 = vmatpush.msra.mxu3 %v1193_v27 }
  0xc7   :  { %773 = vmatpush.msra.mxu3 %v1205_v56 }
  0xc9   :  { %775 = vmatpush.msra.mxu3 %v1225_v50 }
  0xcb   :  { %777 = vmatpush.msra.mxu3 %v472_v34 }
 0x10c   :  { %v221_v24 = vpop.f32.mrf.mxu1 }
 0x114   :  { %v120_v25 = vpop.f32.mrf.mxu0  ;;  %v275_v37 = vpop.f32.mrf.mxu2 }
 0x115   :  { %v121_v32 = vadd.f32 %v807_v23, %v120_v25  ;;  %v420_v62 = vpop.f32.mrf.mxu1 }
 0x116   :  { %v314_v51 = vpop.f32.mrf.mxu3 }
 0x117   :  { %v222_v36 = vadd.f32 %v221_v24, %v121_v32 }
 0x119   :  { %v276_v49 = vadd.f32 %v275_v37, %v222_v36 }
 0x11b   :  { %v315_v52 = vadd.f32 %v314_v51, %v276_v49 }
 0x11c   :  { %v383_v55 = vpop.f32.mrf.mxu0 }
 0x11d   :  { %v384_v61 = vadd.f32 %v383_v55, %v315_v52 }
 0x11f   :  { %v421_v63 = vadd.f32 %v420_v62, %v384_v61 }
 0x121   :  { %v423_v3 = vmax.f32 %v421_v63, 0.0 }
 0x123   :  { %v474_v4 = vand.u32 4294901760, %v423_v3 }
 0x125   :  { %v475_v7 = vsub.f32 %v423_v3, %v474_v4  ;;  %580 = vmatmul.f32.vlgmr.msrb.gmra.mxu3 %v474_v4 }
 0x127   :  { %634 = vmatmul.f32.vlgmr.msra.gmra.mxu0 %v475_v7  ;;  %v476_v15 = vand.u32 4294901760, %v475_v7 }
 0x129   :  { %673 = vmatmul.f32.vlgmr.msra.gmra.mxu1 %v476_v15  ;;  %v477_v30 = vsub.f32 %v475_v7, %v476_v15 }
 0x12b   :  { %v478_v33 = vand.u32 4294901760, %v477_v30 }
 0x12d   :  { %479 = vmatmul.f32.vlgmr.msrb.gmra.mxu2 %v478_v33  ;;  %779 = vmatmul.f32.vlgmr.msra.gmra.mxu3 %v474_v4 }
 0x135   :  { %742 = vmatmul.f32.vlgmr.msra.gmra.mxu2 %v474_v4 }
 0x1a4   :  { %v635_v31 = vpop.f32.mrf.mxu0 }
 0x1a6   :  { %v674_v11 = vpop.f32.mrf.mxu1 }
 0x1a8   :  { %v581_v60 = vpop.f32.mrf.mxu3 }
 0x1b0   :  { %v480_v1 = vpop.f32.mrf.mxu2  ;;  %v780_v22 = vpop.f32.mrf.mxu3 }
 0x1b1   :  { %v481_v2 = vadd.f32 %v808_v41, %v480_v1 }
 0x1b3   :  { %v582_v8 = vadd.f32 %v581_v60, %v481_v2 }
 0x1b5   :  { %v636_v5 = vadd.f32 %v635_v31, %v582_v8 }
 0x1b7   :  { %v675_v12 = vadd.f32 %v674_v11, %v636_v5 }
 0x1b8   :  { %v743_v16 = vpop.f32.mrf.mxu2 }
 0x1b9   :  { %v744_v21 = vadd.f32 %v743_v16, %v675_v12 }
 0x1bb   :  { %v781_v26 = vadd.f32 %v780_v22, %v744_v21 }
 0x1bd   :  { %784 = vst.msk [vmem:[%s1333_s2] sm:$0xff] %vm783_vm0, %v781_v26 }
 0x1be   :  { %789 = vsyncpa [#allocation3], 1 }

</bundles_post_ra>
